<compile_context>
chip_gen: v7x
topology: tpu7x:2x2x1
jax: 0.10.0
libtpu: 0.0.40
codegen_flags: <defaults>
</compile_context>

<pallas_src>
import functools

import jax
import jax.numpy as jnp
from jax import lax
from jax.experimental import pallas as pl
from jax.experimental.pallas import tpu as pltpu


def _round_up(x, m):
    return ((x + m - 1) // m) * m


def _attention_kernel(n_rows, tn, tiles_per_split,
                      z_ref, w1_ref, b1_ref, w2t_ref,
                      m_out, l_out, acc_out,
                      m_sc, l_sc, acc_sc):
    c = pl.program_id(0)          # split (TensorCore) index
    i = pl.program_id(1)          # row-tile index within this split

    @pl.when(i == 0)
    def _init():
        m_sc[...] = jnp.full(m_sc.shape, -1e30, jnp.float32)
        l_sc[...] = jnp.zeros(l_sc.shape, jnp.float32)
        acc_sc[...] = jnp.zeros(acc_sc.shape, jnp.float32)

    # Absolute row ids of this logical tile.  Trailing tiles of the last
    # split may lie entirely past N; those rows are fully masked below (their
    # DMA block index is clamped in the index_map so it is never OOB).
    row0 = (c * tiles_per_split + i) * tn
    row = row0 + lax.broadcasted_iota(jnp.int32, (tn, 1), 0)
    valid = row < n_rows                                             # (TN, 1)

    # OOB block data is undefined (could be NaN/Inf): zero masked rows before
    # they touch the matmul or the weighted sum.
    z = jnp.where(valid, z_ref[...].astype(jnp.float32), 0.0)        # (TN, D)

    # Projection: Linear -> tanh (MXU, full-precision f32 so the reference
    # tolerance holds; tanh rides the EUP slot).
    h = jnp.tanh(
        jnp.dot(z, w1_ref[...], preferred_element_type=jnp.float32,
                precision=lax.Precision.HIGHEST) + b1_ref[...])      # (TN, H)
    # Width-1 second Linear -> VPU multiply + lane reduce.  b2 is omitted:
    # softmax over rows is invariant to a constant shift.
    w = jnp.sum(h * w2t_ref[...], axis=-1, keepdims=True)            # (TN, 1)
    w = jnp.where(valid, w, -1e30)

    # Online softmax over rows + running unnormalized weighted sum.
    m_prev = m_sc[...]                                               # (1, 1)
    m_new = jnp.maximum(m_prev, jnp.max(w, keepdims=True))           # (1, 1)
    alpha = jnp.exp(m_prev - m_new)                                  # (1, 1)
    e = jnp.where(valid, jnp.exp(w - m_new), 0.0)                    # (TN, 1)
    l_sc[...] = alpha * l_sc[...] + jnp.sum(e, keepdims=True)
    # TODO(synk): on v7x, once the memory fixes saturate HBM, swap this VPU
    # sublane reduce for lax.dot_general(e, z, (((0,), (0,)), ((), ()))) so
    # the weighted row-sum rides the otherwise-idle MXU.
    acc_sc[...] = alpha * acc_sc[...] + jnp.sum(e * z, axis=0, keepdims=True)
    m_sc[...] = m_new

    @pl.when(i == pl.num_programs(1) - 1)
    def _finalize():
        m_out[0] = m_sc[...]
        l_out[0] = l_sc[...]
        acc_out[0] = acc_sc[...]


def one_graph_attention(z, w1, b1, w2, b2, *, tn=None, num_splits=1):
    """z: (N, in_size) float.  Returns embed: (1, in_size), dtype of z."""
    n, d = z.shape
    hid = w1.shape[1]
    del b2  # softmax(w + b2, dim=0) == softmax(w, dim=0): constant row shift.

    z_itemsize = jnp.dtype(z.dtype).itemsize
    dp = _round_up(d, 128)        # lane-padded width as laid out in VMEM

    # Row tile: target ~4 MiB of z per tile so per-grid-step overhead is
    # amortized, while 2 double-buffered tiles stay far below every chip's
    # VMEM (v5e 16 MiB scoped default handled via vmem_limit_bytes below).
    if tn is None:
        target_tile_bytes = 4 * 1024 * 1024
        tn = max(8, target_tile_bytes // (dp * z_itemsize))
        tn = min(tn, _round_up(n, 8))
        tn = max(8, (tn // 8) * 8)

    num_tiles = pl.cdiv(n, tn)
    num_splits = int(max(1, min(num_splits, num_tiles)))
    tiles_per_split = pl.cdiv(num_tiles, num_splits)

    w1_f = w1.astype(jnp.float32).reshape(d, hid)
    b1_f = b1.astype(jnp.float32).reshape(1, hid)
    w2t_f = w2.astype(jnp.float32).reshape(1, hid)     # (H, 1) -> (1, H)

    # Scoped-VMEM budget from the actual buffers (+ slack).
    # TODO(synk): mark W1/b1/w2t single-buffered (pipeline_mode=pl.Buffered(1))
    # when d*hid is large; their index_map is constant so the 2nd buffer is
    # never refetched.
    est = (2 * tn * dp * z_itemsize                          # z double buffer
           + 2 * _round_up(d, 8) * _round_up(hid, 128) * 4   # W1 (dbl-buffered)
           + 6 * 8 * 128 * 4                                 # b1 / w2t / tiny outs
           + 4 * 8 * dp * 4)                                 # acc scratch + out
    vmem_limit = min(60 << 20, max(32 << 20, int(est * 1.25) + (4 << 20)))

    kernel = functools.partial(_attention_kernel, n, tn, tiles_per_split)

    def z_map(c, i):
        # Clamp so the (fully masked) overflow tiles of the last split never
        # issue an out-of-range block DMA.
        return (jnp.minimum(c * tiles_per_split + i, num_tiles - 1), 0)

    m_p, l_p, acc_p = pl.pallas_call(
        kernel,
        grid=(num_splits, tiles_per_split),
        in_specs=[
            pl.BlockSpec((tn, d), z_map),                    # z row tiles
            pl.BlockSpec((d, hid), lambda c, i: (0, 0)),     # W1 (resident)
            pl.BlockSpec((1, hid), lambda c, i: (0, 0)),     # b1
            pl.BlockSpec((1, hid), lambda c, i: (0, 0)),     # w2^T
        ],
        out_specs=(
            pl.BlockSpec((1, 1, 1), lambda c, i: (c, 0, 0)),  # per-split m
            pl.BlockSpec((1, 1, 1), lambda c, i: (c, 0, 0)),  # per-split l
            pl.BlockSpec((1, 1, d), lambda c, i: (c, 0, 0)),  # per-split acc
        ),
        out_shape=(
            jax.ShapeDtypeStruct((num_splits, 1, 1), jnp.float32),
            jax.ShapeDtypeStruct((num_splits, 1, 1), jnp.float32),
            jax.ShapeDtypeStruct((num_splits, 1, d), jnp.float32),
        ),
        scratch_shapes=[
            pltpu.VMEM((1, 1), jnp.float32),    # running max  m
            pltpu.VMEM((1, 1), jnp.float32),    # running sum  l
            pltpu.VMEM((1, d), jnp.float32),    # running weighted sum
        ],
        compiler_params=pltpu.CompilerParams(
            dimension_semantics=("parallel", "arbitrary"),
            vmem_limit_bytes=vmem_limit),
    )(z, w1_f, b1_f, w2t_f)

    # Merge the per-split online-softmax partials (tiny (C, D) epilogue).
    m_g = jnp.max(m_p, axis=0)                  # (1, 1)
    scale = jnp.exp(m_p - m_g)                  # (C, 1, 1)
    l_g = jnp.sum(l_p * scale, axis=0)          # (1, 1)
    acc_g = jnp.sum(acc_p * scale, axis=0)      # (1, d)
    return (acc_g / l_g).astype(z.dtype)


def init_params(key, in_size, hidden_size=32):
    """Deterministic init mimicking nn.Linear's U(-1/sqrt(fan_in), 1/sqrt(fan_in))."""
    k1, k2, k3, k4 = jax.random.split(key, 4)
    lim1 = 1.0 / jnp.sqrt(jnp.float32(in_size))
    lim2 = 1.0 / jnp.sqrt(jnp.float32(hidden_size))
    w1 = jax.random.uniform(k1, (in_size, hidden_size), jnp.float32, -lim1, lim1)
    b1 = jax.random.uniform(k2, (1, hidden_size), jnp.float32, -lim1, lim1)
    w2 = jax.random.uniform(k3, (hidden_size, 1), jnp.float32, -lim2, lim2)
    b2 = jax.random.uniform(k4, (1, 1), jnp.float32, -lim2, lim2)
    return w1, b1, w2, b2


def reference(z, w1, b1, w2, b2):
    w = jnp.tanh(z @ w1 + b1) @ w2 + b2
    beta = jax.nn.softmax(w, axis=0)
    return beta.T @ z


if __name__ == "__main__":
    # High-precision f32 matmuls for the pure-JAX reference so the comparison
    # is meaningful (TPU otherwise lowers f32 dots to 1-pass bf16 by default).
    jax.config.update("jax_default_matmul_precision", "highest")

    key = jax.random.PRNGKey(0)
    kz, kp, kz2, kp2 = jax.random.split(key, 4)

    # Case 1: module defaults (hidden_size=32), tiny N/D -> single tile.
    N, IN_SIZE, HIDDEN = 8, 32, 32
    z = jax.random.normal(kz, (N, IN_SIZE), jnp.float32)
    w1, b1, w2, b2 = init_params(kp, IN_SIZE, HIDDEN)
    embed = jax.block_until_ready(one_graph_attention(z, w1, b1, w2, b2))
    ref = reference(z, w1, b1, w2, b2)
    assert embed.shape == (1, IN_SIZE)
    assert jnp.allclose(embed, ref, atol=5e-5, rtol=5e-5), (embed, ref)

    # Case 2: ragged N (not a multiple of the row tile), D not a multiple of
    # 128, and a 2-way split of the reduction -> exercises the multi-tile
    # online softmax, OOB row masking, the clamped overflow tile, and the
    # cross-split merge used for v7x's two TensorCores.
    N2, D2 = 37, 50
    z2 = jax.random.normal(kz2, (N2, D2), jnp.float32)
    w1b, b1b, w2b, b2b = init_params(kp2, D2, HIDDEN)
    embed2 = jax.block_until_ready(
        one_graph_attention(z2, w1b, b1b, w2b, b2b, tn=16, num_splits=2))
    ref2 = reference(z2, w1b, b1b, w2b, b2b)
    assert embed2.shape == (1, D2)
    assert jnp.allclose(embed2, ref2, atol=5e-5, rtol=5e-5), (embed2, ref2)

    print("KERNEL_OK")
</pallas_src>

<mosaic_0001>
module attributes {stable_mosaic.version = 11 : i64} {
  func.func @_attention_kernel(%arg0: i32, %arg1: i32, %arg2: memref<8x32xf32, #tpu.memory_space<vmem>>, %arg3: memref<32x32xf32, #tpu.memory_space<vmem>>, %arg4: memref<1x32xf32, #tpu.memory_space<vmem>>, %arg5: memref<1x32xf32, #tpu.memory_space<vmem>>, %arg6: memref<1x1x1xf32, #tpu.memory_space<vmem>>, %arg7: memref<1x1x1xf32, #tpu.memory_space<vmem>>, %arg8: memref<1x1x32xf32, #tpu.memory_space<vmem>>, %arg9: memref<1x1xf32, #tpu.memory_space<vmem>>, %arg10: memref<1x1xf32, #tpu.memory_space<vmem>>, %arg11: memref<1x32xf32, #tpu.memory_space<vmem>>) attributes {dimension_semantics = [#tpu.dimension_semantics<parallel>, #tpu.dimension_semantics<arbitrary>], iteration_bounds = array<i64: 1, 1>, scalar_prefetch = 0 : i64, scratch_operands = 3 : i64, tpu.core_type = #tpu.core_type<tc>, window_params = [{transform_indices = @transform_0, window_bounds = array<i64: 8, 32>}, {pipeline_mode = #tpu.pipeline_mode<synchronous>, transform_indices = @transform_1, window_bounds = array<i64: 32, 32>}, {pipeline_mode = #tpu.pipeline_mode<synchronous>, transform_indices = @transform_2, window_bounds = array<i64: 1, 32>}, {pipeline_mode = #tpu.pipeline_mode<synchronous>, transform_indices = @transform_3, window_bounds = array<i64: 1, 32>}, {transform_indices = @transform_4, window_bounds = array<i64: 1, 1, 1>}, {transform_indices = @transform_5, window_bounds = array<i64: 1, 1, 1>}, {transform_indices = @transform_6, window_bounds = array<i64: 1, 1, 32>}]} {
    %c0_i32 = arith.constant 0 : i32
    %0 = arith.cmpi eq, %arg1, %c0_i32 : i32
    %1 = arith.extui %0 : i1 to i32
    %c0_i32_0 = arith.constant 0 : i32
    %2 = arith.cmpi ne, %1, %c0_i32_0 : i32
    scf.if %2 {
      %cst_30 = arith.constant -1.000000e+30 : f32
      %65 = vector.broadcast %cst_30 : f32 to vector<1x1xf32>
      %c0_31 = arith.constant 0 : index
      %c0_32 = arith.constant 0 : index
      %66 = vector.load %arg9[%c0_31, %c0_32] : memref<1x1xf32, #tpu.memory_space<vmem>>, vector<1x1xf32>
      tpu.vector_store %arg9[%c0_31, %c0_32], %65 {strides = array<i32>} : memref<1x1xf32, #tpu.memory_space<vmem>>, vector<1x1xf32>,
      %cst_33 = arith.constant 0.000000e+00 : f32
      %67 = vector.broadcast %cst_33 : f32 to vector<1x1xf32>
      %c0_34 = arith.constant 0 : index
      %c0_35 = arith.constant 0 : index
      %68 = vector.load %arg10[%c0_34, %c0_35] : memref<1x1xf32, #tpu.memory_space<vmem>>, vector<1x1xf32>
      tpu.vector_store %arg10[%c0_34, %c0_35], %67 {strides = array<i32>} : memref<1x1xf32, #tpu.memory_space<vmem>>, vector<1x1xf32>,
      %cst_36 = arith.constant 0.000000e+00 : f32
      %69 = vector.broadcast %cst_36 : f32 to vector<1x32xf32>
      %c0_37 = arith.constant 0 : index
      %c0_38 = arith.constant 0 : index
      %70 = vector.load %arg11[%c0_37, %c0_38] : memref<1x32xf32, #tpu.memory_space<vmem>>, vector<1x32xf32>
      tpu.vector_store %arg11[%c0_37, %c0_38], %69 {strides = array<i32>} : memref<1x32xf32, #tpu.memory_space<vmem>>, vector<1x32xf32>,
    } else {
    }
    %c1_i32 = arith.constant 1 : i32
    %3 = arith.muli %arg0, %c1_i32 : i32
    %4 = arith.addi %3, %arg1 : i32
    %c8_i32 = arith.constant 8 : i32
    %5 = arith.muli %4, %c8_i32 : i32
    %6 = tpu.iota {dimensions = array<i32: 0>} : vector<8x1xi32>
    %7 = vector.broadcast %5 : i32 to vector<8x1xi32>
    %8 = arith.addi %7, %6 : vector<8x1xi32>
    %c8_i32_1 = arith.constant 8 : i32
    %9 = vector.broadcast %c8_i32_1 : i32 to vector<8x1xi32>
    %10 = arith.cmpi slt, %8, %9 : vector<8x1xi32>
    %c0 = arith.constant 0 : index
    %c0_2 = arith.constant 0 : index
    %11 = vector.load %arg2[%c0, %c0_2] : memref<8x32xf32, #tpu.memory_space<vmem>>, vector<8x32xf32>
    %cst = arith.constant 0.000000e+00 : f32
    %12 = vector.shape_cast %10 : vector<8x1xi1> to vector<8x1xi1>
    %13 = vector.broadcast %12 : vector<8x1xi1> to vector<8x32xi1>
    %14 = vector.broadcast %cst : f32 to vector<8x32xf32>
    %15 = arith.select %13, %11, %14 : vector<8x32xi1>, vector<8x32xf32>
    %c0_3 = arith.constant 0 : index
    %c0_4 = arith.constant 0 : index
    %16 = vector.load %arg3[%c0_3, %c0_4] : memref<32x32xf32, #tpu.memory_space<vmem>>, vector<32x32xf32>
    %cst_5 = arith.constant dense<0.000000e+00> : vector<8x32xf32>
    %17 = tpu.matmul %15, %16, %cst_5 {dimension_numbers = #tpu.dot_dimension_numbers<[1], [0], [0], [1], [0, 0, 1, 1], [], []>, precision = #tpu.contract_precision<fp32>} : vector<8x32xf32>, vector<32x32xf32>, vector<8x32xf32> -> vector<8x32xf32>
    %c0_6 = arith.constant 0 : index
    %c0_7 = arith.constant 0 : index
    %18 = vector.load %arg4[%c0_6, %c0_7] : memref<1x32xf32, #tpu.memory_space<vmem>>, vector<1x32xf32>
    %19 = vector.broadcast %18 : vector<1x32xf32> to vector<8x32xf32>
    %20 = arith.addf %17, %19 : vector<8x32xf32>
    %21 = math.tanh %20 : vector<8x32xf32>
    %c0_8 = arith.constant 0 : index
    %c0_9 = arith.constant 0 : index
    %22 = vector.load %arg5[%c0_8, %c0_9] : memref<1x32xf32, #tpu.memory_space<vmem>>, vector<1x32xf32>
    %23 = vector.broadcast %22 : vector<1x32xf32> to vector<8x32xf32>
    %24 = arith.mulf %21, %23 : vector<8x32xf32>
    %cst_10 = arith.constant dense<0.000000e+00> : vector<8xf32>
    %25 = vector.multi_reduction <add>, %24, %cst_10 [1] : vector<8x32xf32> to vector<8xf32>
    %26 = vector.shape_cast %25 : vector<8xf32> to vector<8x1xf32>
    %cst_11 = arith.constant -1.000000e+30 : f32
    %27 = vector.broadcast %cst_11 : f32 to vector<8x1xf32>
    %28 = arith.select %10, %26, %27 : vector<8x1xi1>, vector<8x1xf32>
    %c0_12 = arith.constant 0 : index
    %c0_13 = arith.constant 0 : index
    %29 = vector.load %arg9[%c0_12, %c0_13] : memref<1x1xf32, #tpu.memory_space<vmem>>, vector<1x1xf32>
    %30 = vector.shape_cast %28 : vector<8x1xf32> to vector<1x8x1xf32>
    %cst_14 = arith.constant dense<0xFF800000> : vector<1xf32>
    %31 = vector.multi_reduction <maximumf>, %30, %cst_14 [1, 2] : vector<1x8x1xf32> to vector<1xf32>
    %32 = vector.shape_cast %31 : vector<1xf32> to vector<1x1x1xf32>
    %33 = vector.extract %32[0, 0, 0] : f32 from vector<1x1x1xf32>
    %34 = vector.broadcast %33 : f32 to vector<1x1xf32>
    %35 = arith.maximumf %29, %34 : vector<1x1xf32>
    %36 = arith.subf %29, %35 : vector<1x1xf32>
    %37 = math.exp %36 : vector<1x1xf32>
    %38 = vector.broadcast %35 : vector<1x1xf32> to vector<8x1xf32>
    %39 = arith.subf %28, %38 : vector<8x1xf32>
    %40 = math.exp %39 : vector<8x1xf32>
    %cst_15 = arith.constant 0.000000e+00 : f32
    %41 = vector.broadcast %cst_15 : f32 to vector<8x1xf32>
    %42 = arith.select %10, %40, %41 : vector<8x1xi1>, vector<8x1xf32>
    %c0_16 = arith.constant 0 : index
    %c0_17 = arith.constant 0 : index
    %43 = vector.load %arg10[%c0_16, %c0_17] : memref<1x1xf32, #tpu.memory_space<vmem>>, vector<1x1xf32>
    %44 = arith.mulf %37, %43 : vector<1x1xf32>
    %45 = vector.shape_cast %42 : vector<8x1xf32> to vector<1x8x1xf32>
    %cst_18 = arith.constant dense<0.000000e+00> : vector<1xf32>
    %46 = vector.multi_reduction <add>, %45, %cst_18 [1, 2] : vector<1x8x1xf32> to vector<1xf32>
    %47 = vector.shape_cast %46 : vector<1xf32> to vector<1x1x1xf32>
    %48 = vector.extract %47[0, 0, 0] : f32 from vector<1x1x1xf32>
    %49 = vector.broadcast %48 : f32 to vector<1x1xf32>
    %50 = arith.addf %44, %49 : vector<1x1xf32>
    %c0_19 = arith.constant 0 : index
    %c0_20 = arith.constant 0 : index
    %51 = vector.load %arg10[%c0_19, %c0_20] : memref<1x1xf32, #tpu.memory_space<vmem>>, vector<1x1xf32>
    tpu.vector_store %arg10[%c0_19, %c0_20], %50 {strides = array<i32>} : memref<1x1xf32, #tpu.memory_space<vmem>>, vector<1x1xf32>,
    %c0_21 = arith.constant 0 : index
    %c0_22 = arith.constant 0 : index
    %52 = vector.load %arg11[%c0_21, %c0_22] : memref<1x32xf32, #tpu.memory_space<vmem>>, vector<1x32xf32>
    %53 = vector.broadcast %37 : vector<1x1xf32> to vector<1x32xf32>
    %54 = arith.mulf %53, %52 : vector<1x32xf32>
    %55 = vector.broadcast %42 : vector<8x1xf32> to vector<8x32xf32>
    %56 = arith.mulf %55, %15 : vector<8x32xf32>
    %cst_23 = arith.constant dense<0.000000e+00> : vector<32xf32>
    %57 = vector.multi_reduction <add>, %56, %cst_23 [0] : vector<8x32xf32> to vector<32xf32>
    %58 = vector.shape_cast %57 : vector<32xf32> to vector<1x32xf32>
    %59 = arith.addf %54, %58 : vector<1x32xf32>
    %c0_24 = arith.constant 0 : index
    %c0_25 = arith.constant 0 : index
    %60 = vector.load %arg11[%c0_24, %c0_25] : memref<1x32xf32, #tpu.memory_space<vmem>>, vector<1x32xf32>
    tpu.vector_store %arg11[%c0_24, %c0_25], %59 {strides = array<i32>} : memref<1x32xf32, #tpu.memory_space<vmem>>, vector<1x32xf32>,
    %c0_26 = arith.constant 0 : index
    %c0_27 = arith.constant 0 : index
    %61 = vector.load %arg9[%c0_26, %c0_27] : memref<1x1xf32, #tpu.memory_space<vmem>>, vector<1x1xf32>
    tpu.vector_store %arg9[%c0_26, %c0_27], %35 {strides = array<i32>} : memref<1x1xf32, #tpu.memory_space<vmem>>, vector<1x1xf32>,
    %c0_i32_28 = arith.constant 0 : i32
    %62 = arith.cmpi eq, %arg1, %c0_i32_28 : i32
    %63 = arith.extui %62 : i1 to i32
    %c0_i32_29 = arith.constant 0 : i32
    %64 = arith.cmpi ne, %63, %c0_i32_29 : i32
    scf.if %64 {
      %c0_30 = arith.constant 0 : index
      %c0_31 = arith.constant 0 : index
      %65 = vector.load %arg9[%c0_30, %c0_31] : memref<1x1xf32, #tpu.memory_space<vmem>>, vector<1x1xf32>
      %c0_32 = arith.constant 0 : index
      %c0_33 = arith.constant 0 : index
      %c0_34 = arith.constant 0 : index
      %66 = vector.load %arg6[%c0_32, %c0_33, %c0_34] : memref<1x1x1xf32, #tpu.memory_space<vmem>>, vector<1x1x1xf32>
      %67 = vector.shape_cast %66 : vector<1x1x1xf32> to vector<1x1xf32>
      %68 = vector.shape_cast %65 : vector<1x1xf32> to vector<1x1x1xf32>
      tpu.vector_store %arg6[%c0_32, %c0_33, %c0_34], %68 {strides = array<i32>} : memref<1x1x1xf32, #tpu.memory_space<vmem>>, vector<1x1x1xf32>,
      %c0_35 = arith.constant 0 : index
      %c0_36 = arith.constant 0 : index
      %69 = vector.load %arg10[%c0_35, %c0_36] : memref<1x1xf32, #tpu.memory_space<vmem>>, vector<1x1xf32>
      %c0_37 = arith.constant 0 : index
      %c0_38 = arith.constant 0 : index
      %c0_39 = arith.constant 0 : index
      %70 = vector.load %arg7[%c0_37, %c0_38, %c0_39] : memref<1x1x1xf32, #tpu.memory_space<vmem>>, vector<1x1x1xf32>
      %71 = vector.shape_cast %70 : vector<1x1x1xf32> to vector<1x1xf32>
      %72 = vector.shape_cast %69 : vector<1x1xf32> to vector<1x1x1xf32>
      tpu.vector_store %arg7[%c0_37, %c0_38, %c0_39], %72 {strides = array<i32>} : memref<1x1x1xf32, #tpu.memory_space<vmem>>, vector<1x1x1xf32>,
      %c0_40 = arith.constant 0 : index
      %c0_41 = arith.constant 0 : index
      %73 = vector.load %arg11[%c0_40, %c0_41] : memref<1x32xf32, #tpu.memory_space<vmem>>, vector<1x32xf32>
      %c0_42 = arith.constant 0 : index
      %c0_43 = arith.constant 0 : index
      %c0_44 = arith.constant 0 : index
      %74 = vector.load %arg8[%c0_42, %c0_43, %c0_44] : memref<1x1x32xf32, #tpu.memory_space<vmem>>, vector<1x1x32xf32>
      %75 = vector.shape_cast %74 : vector<1x1x32xf32> to vector<1x32xf32>
      %76 = vector.shape_cast %73 : vector<1x32xf32> to vector<1x1x32xf32>
      tpu.vector_store %arg8[%c0_42, %c0_43, %c0_44], %76 {strides = array<i32>} : memref<1x1x32xf32, #tpu.memory_space<vmem>>, vector<1x1x32xf32>,
    } else {
    }
    return
  }
  func.func @transform_0(%arg0: i32, %arg1: i32) -> (i32, i32) {
    %c1_i32 = arith.constant 1 : i32
    %0 = arith.muli %arg0, %c1_i32 : i32
    %1 = arith.addi %0, %arg1 : i32
    %c0_i32 = arith.constant 0 : i32
    %2 = arith.minsi %1, %c0_i32 : i32
    %c0_i32_0 = arith.constant 0 : i32
    %c0_i32_1 = arith.constant 0 : i32
    return %2, %c0_i32_0 : i32, i32
  }
  func.func @transform_1(%arg0: i32, %arg1: i32) -> (i32, i32) {
    %c0_i32 = arith.constant 0 : i32
    %c0_i32_0 = arith.constant 0 : i32
    %c0_i32_1 = arith.constant 0 : i32
    return %c0_i32, %c0_i32_0 : i32, i32
  }
  func.func @transform_2(%arg0: i32, %arg1: i32) -> (i32, i32) {
    %c0_i32 = arith.constant 0 : i32
    %c0_i32_0 = arith.constant 0 : i32
    %c0_i32_1 = arith.constant 0 : i32
    return %c0_i32, %c0_i32_0 : i32, i32
  }
  func.func @transform_3(%arg0: i32, %arg1: i32) -> (i32, i32) {
    %c0_i32 = arith.constant 0 : i32
    %c0_i32_0 = arith.constant 0 : i32
    %c0_i32_1 = arith.constant 0 : i32
    return %c0_i32, %c0_i32_0 : i32, i32
  }
  func.func @transform_4(%arg0: i32, %arg1: i32) -> (i32, i32, i32) {
    %c0_i32 = arith.constant 0 : i32
    %c0_i32_0 = arith.constant 0 : i32
    %c0_i32_1 = arith.constant 0 : i32
    return %arg0, %c0_i32, %c0_i32_0 : i32, i32, i32
  }
  func.func @transform_5(%arg0: i32, %arg1: i32) -> (i32, i32, i32) {
    %c0_i32 = arith.constant 0 : i32
    %c0_i32_0 = arith.constant 0 : i32
    %c0_i32_1 = arith.constant 0 : i32
    return %arg0, %c0_i32, %c0_i32_0 : i32, i32, i32
  }
  func.func @transform_6(%arg0: i32, %arg1: i32) -> (i32, i32, i32) {
    %c0_i32 = arith.constant 0 : i32
    %c0_i32_0 = arith.constant 0 : i32
    %c0_i32_1 = arith.constant 0 : i32
    return %arg0, %c0_i32, %c0_i32_0 : i32, i32, i32
  }
}

</mosaic_0001>

<bundles_post_ra>
// kernel: tpu_custom_call.1
= control target key start
LH: loop header
LB: loop body
LE: loop exit
PB: predicated region body
PF: predicated region fallthrough
CT: control target
= control target key end

     0   :  { %12 = vsyncpa [#allocation6], 0  ;;  %s1167_s0 = inlined_call_operand.hbm [shape: f32[8,32], index: 0, kind: input, shape index: {}]   ;;  %s1168_s1 = inlined_call_operand.hbm [shape: f32[32,32], index: 1, kind: input, shape index: {}]   ;;  %s1169_s2 = inlined_call_operand.vmem [shape: f32[1,32], index: 2, kind: input, shape index: {}]   ;;  %s1170_s3 = inlined_call_operand.vmem [shape: f32[1,32], index: 3, kind: input, shape index: {}]   ;;  %s1171_s4 = inlined_call_operand.hbm [shape: f32[1,1,1], index: 4, kind: output, shape index: {0}]   ;;  %s1172_s5 = inlined_call_operand.hbm [shape: f32[1,1,1], index: 5, kind: output, shape index: {1}]   ;;  %s1173_s6 = inlined_call_operand.hbm [shape: f32[1,1,32], index: 6, kind: output, shape index: {2}]  }
   0x1   :  { %13 = vsyncpa [#allocation9], 0 }
   0x2   :  { %14 = vsyncpa [#allocation7], 0 }
   0x3   :  { %15 = vsyncpa [#allocation12], 0  ;;  %s997_s21 = smov [#allocation5]   ;;  %s998_s23 = smov [#allocation8]  }
   0x4   :  { %s27_s22 = sshll.u32 %s997_s21, 4  ;;  %s36_s24 = sshll.u32 %s998_s23, 4  ;;  %s28_s22 = int_to_ptr.vmem [resolvable:$true] %s27_s22  ;;  %s1044_s24 = int_to_ptr.vmem [resolvable:$true] %s36_s24 }
   0x5   :  { %s879_s27 = scalar_lea.hbm %s1167_s0, 128 }
   0x6   :  { %p880_p0 = scmp.ne.s32.totalorder %s1167_s0, %s879_s27  ;;  %p883_p1 = scmp.lt.u32.totalorder %s879_s27, %s1167_s0 }
   0x8   :  { %p885_p2 = pnand %p883_p1, %p880_p0 }
   0xa   :  { %888 = shalt.err (!%p885_p2)
}
   0xb   :  { %s889_s8 = scalar_lea.vmem %s28_s22, 128  ;;  %p894_p4 = scmp.lt.s32.totalorder %s28_s22, %s28_s22 }
   0xc   :  { %p890_p3 = scmp.ne.s32.totalorder %s28_s22, %s889_s8  ;;  %p895_p5 = scmp.lt.s32.totalorder %s889_s8, %s889_s8 }
   0xe   :  { %p896_p6 = por %p895_p5, %p894_p4 }
  0x10   :  { %p897_p7 = pnand %p896_p6, %p890_p3 }
  0x12   :  { %900 = shalt.err (!%p897_p7)
}
  0x13   :  { %30 = dma.hbm_to_vmem [thread:$0]  %s1167_s0, 128, %s28_s22, [#allocation6]  }
  0x14   :  { %s901_s13 = scalar_lea.hbm %s1168_s1, 512 }
  0x15   :  { %p902_p8 = scmp.ne.s32.totalorder %s1168_s1, %s901_s13  ;;  %p905_p9 = scmp.lt.u32.totalorder %s901_s13, %s1168_s1 }
  0x17   :  { %p907_p10 = pnand %p905_p9, %p902_p8 }
  0x19   :  { %910 = shalt.err (!%p907_p10)
}
  0x1a   :  { %s911_s18 = scalar_lea.vmem %s1044_s24, 512  ;;  %p916_p12 = scmp.lt.s32.totalorder %s1044_s24, %s1044_s24 }
  0x1b   :  { %p912_p11 = scmp.ne.s32.totalorder %s1044_s24, %s911_s18  ;;  %p917_p13 = scmp.lt.s32.totalorder %s911_s18, %s911_s18 }
  0x1d   :  { %p918_p0 = por %p917_p13, %p916_p12 }
  0x1f   :  { %p919_p1 = pnand %p918_p0, %p912_p11 }
  0x21   :  { %922 = shalt.err (!%p919_p1)
}
  0x22   :  { %s999_s0 = smov 128   ;;  %s1000_s19 = smov 8  }
  0x23   :  { %42 = dma.hbm_to_vmem [thread:$0]  %s1168_s1, 512, %s1044_s24, [#allocation9], %s999_s0, %s999_s0, %s1000_s19  }
  0x24   :  { %989 = dma.done.wait [#allocation6], 128  }
  0x25   :  { %990 = vsyncadd [#allocation6], 4294967168 }
  0x26   :  { %991 = dma.done.wait [#allocation9], 512  }
  0x27   :  { %992 = vsyncadd [#allocation9], 4294966784  ;;  %v1001_v0 = vmov 0.0|0.0   ;;  %vm1002_vm0 = vmmov 0   ;;  %v1003_v1 = vmov 0.0   ;;  %vm87_vm1 = vcmask 261120  }
  0x28   :  { %809 = vmatprep.subr.bf16.mxu1 %v1001_v0  ;;  %827 = vmatprep.subr.bf16.mxu0 %v1001_v0  ;;  %v76_v2 = vld [vmem:[#allocation8] sm:$0xff]  ;;  %v77_v3 = vld [vmem:[#allocation8 + $0x8] sm:$0xff]  ;;  %v78_v4 = vld [vmem:[#allocation8 + $0x10] sm:$0xff]  ;;  %vm60_vm2 = vcmask 0   ;;  %v1004_v52 = vmov -1e+30   ;;  %v603_v61 = vlaneseq }
  0x29   :  { %751 = vmatprep.mubr.msk.f32.mxu1 %vm1002_vm0, %v1003_v1  ;;  %784 = vmatprep.mubr.msk.f32.mxu0 %vm1002_vm0, %v1003_v1  ;;  %v92_v5 = vand.u32 4294901760, %v76_v2  ;;  %v95_v6 = vand.u32 4294901760, %v77_v3  ;;  %v79_v7 = vld [vmem:[#allocation8 + $0x18] sm:$0xff]  ;;  %v98_v8 = vand.u32 4294901760, %v78_v4  ;;  %v711_v41 = vld [vmem:[%s1169_s2] ss:$0 sm:$0xff] }
  0x2a   :  { %v1081_v9 = vld [vmem:[#allocation5] sm:$0xff]  ;;  %v101_v10 = vand.u32 4294901760, %v79_v7  ;;  %v712_v48 = vld [vmem:[%s1170_s3] ss:$0 sm:$0xff]  ;;  %61 = vst.msk [vmem:[#allocation2] sm:$0x1] %vm60_vm2, %v1004_v52 }
  0x2b   :  { %v89_v11 = vsel %vm87_vm1, %v1081_v9, 0  ;;  %v810_v12 = vpack.c.bf16 %v95_v6, %v92_v5  ;;  %v172_v13 = vsub.f32 %v76_v2, %v92_v5  ;;  %v179_v14 = vsub.f32 %v77_v3, %v95_v6  ;;  %62 = vst.msk [vmem:[#allocation3] sm:$0x1] %vm60_vm2, %v1003_v1  ;;  %s1006_s3 = smov [#allocation10]  }
  0x2c   :  { %v186_v15 = vsub.f32 %v78_v4, %v98_v8  ;;  %v193_v16 = vsub.f32 %v79_v7, %v101_v10  ;;  %v160_v17 = vand.u32 4294901760, %v89_v11  ;;  %v813_v18 = vpack.c.bf16 %v101_v10, %v98_v8  ;;  %s672_s25 = sshll.u32 %s1006_s3, 4  ;;  %s673_s25 = int_to_ptr.vmem [resolvable:$true] %s672_s25 }
  0x2d   :  { %811 = vmatpush3.bf16.msra.mxu1 %v810_v12  ;;  %829 = vmatpush3.bf16.msra.mxu0 %v810_v12  ;;  %v173_v19 = vand.u32 4294901760, %v172_v13  ;;  %v180_v20 = vand.u32 4294901760, %v179_v14  ;;  %v822_v39 = vpack.c.bf16 %v179_v14, %v172_v13  ;;  %v1005_v53 = vmov 0   ;;  %s923_s26 = scalar_lea.vmem %s673_s25, 16  ;;  %s927_s27 = scalar_lea.vmem %s673_s25, 32 }
  0x2e   :  { %v187_v21 = vand.u32 4294901760, %v186_v15  ;;  %812 = vmatprep.subr.bf16.mxu1 %v1001_v0  ;;  %830 = vmatprep.subr.bf16.mxu0 %v1001_v0  ;;  %v161_v22 = vsub.f32 %v89_v11, %v160_v17  ;;  %v194_v23 = vand.u32 4294901760, %v193_v16  ;;  %v825_v40 = vpack.c.bf16 %v193_v16, %v186_v15  ;;  %p924_p2 = scmp.ne.s32.totalorder %s673_s25, %s923_s26  ;;  %p928_p3 = scmp.lt.s32.totalorder %s673_s25, %s673_s25 }
  0x2f   :  { %v174_v24 = vsub.f32 %v172_v13, %v173_v19  ;;  %v181_v25 = vsub.f32 %v179_v14, %v180_v20  ;;  %v834_v31 = vpack.c.bf16 %v180_v20, %v173_v19  ;;  %871 = vset.pattern.permute.xlu1 %v1005_v53  ;;  %872 = vset.pattern.permute.xlu0 %v1005_v53  ;;  %v604_v62 = vshrl.u32 %v603_v61, 7  ;;  %p929_p4 = scmp.lt.s32.totalorder %s927_s27, %s923_s26 }
  0x30   :  { %v188_v26 = vsub.f32 %v186_v15, %v187_v21  ;;  %v162_v27 = vand.u32 4294901760, %v161_v22  ;;  %v195_v28 = vsub.f32 %v193_v16, %v194_v23  ;;  %v837_v37 = vpack.c.bf16 %v194_v23, %v187_v21 }
  0x31   :  { %814 = vmatpush3.bf16.msra.mxu1 %v813_v18  ;;  %832 = vmatpush3.bf16.msra.mxu0 %v813_v18  ;;  %v175_v29 = vand.u32 4294901760, %v174_v24  ;;  %v182_v30 = vand.u32 4294901760, %v181_v25  ;;  %v589_v63 = vld [vmem:[#allocation2] sm:$0x1]  ;;  %vm614_vm3 = vcmask 7168   ;;  %vm63_vm4 = vcmask 253952   ;;  %p930_p5 = por %p929_p4, %p928_p3 }
  0x32   :  { %v163_v32 = vsub.f32 %v161_v22, %v162_v27  ;;  %815 = vmatprep.subr.bf16.mxu1 %v1001_v0  ;;  %833 = vmatprep.subr.bf16.mxu0 %v1001_v0  ;;  %v189_v34 = vand.u32 4294901760, %v188_v26  ;;  %v196_v35 = vand.u32 4294901760, %v195_v28  ;;  %64 = vst.msk [vmem:[#allocation4] sm:$0x1] %vm63_vm4, %v1003_v1 }
  0x33   :  { %v816_v33 = vpack.c.bf16 %v182_v30, %v175_v29  ;;  %p931_p6 = pnand %p930_p5, %p924_p2 }
  0x34   :  { %v164_v36 = vand.u32 4294901760, %v163_v32  ;;  %785 = vmatmul.mubr.f32.vlgmr.msra.gmra.mrb[0].mxu0 %v162_v27  ;;  %v819_v38 = vpack.c.bf16 %v196_v35, %v189_v34 }
  0x35   :  { %835 = vmatpush3.bf16.msra.mxu0 %v834_v31  ;;  %795 = vmatprep.mubr.msk.f32.mxu0 %vm1002_vm0, %v1003_v1 }
  0x36   :  { %752 = vmatmul.mubr.f32.vlgmr.msra.gmra.mrb[0].mxu1 %v164_v36  ;;  %836 = vmatprep.subr.bf16.mxu0 %v1001_v0 }
  0x37   :  { %817 = vmatpush3.bf16.msra.mxu1 %v816_v33  ;;  %762 = vmatprep.mubr.msk.f32.mxu1 %vm1002_vm0, %v1003_v1 }
  0x38   :  { %818 = vmatprep.subr.bf16.mxu1 %v1001_v0 }
  0x39   :  { %838 = vmatpush3.bf16.msra.mxu0 %v837_v37 }
  0x3a   :  { %839 = vmatprep.subr.bf16.mxu0 %v1001_v0 }
  0x3b   :  { %820 = vmatpush3.bf16.msra.mxu1 %v819_v38 }
  0x3c   :  { %821 = vmatprep.subr.bf16.mxu1 %v1001_v0  ;;  %796 = vmatmul.mubr.f32.vlgmr.msra.gmra.mrb[0].mxu0 %v160_v17 }
  0x3d   :  { %841 = vmatpush3.bf16.msra.mxu0 %v810_v12  ;;  %806 = vmatprep.mubr.msk.f32.mxu0 %vm1002_vm0, %v1003_v1 }
  0x3e   :  { %763 = vmatmul.mubr.f32.vlgmr.msra.gmra.mrb[0].mxu1 %v160_v17  ;;  %842 = vmatprep.subr.bf16.mxu0 %v1001_v0 }
  0x3f   :  { %823 = vmatpush3.bf16.msra.mxu1 %v822_v39  ;;  %773 = vmatprep.mubr.msk.f32.mxu1 %vm1002_vm0, %v1003_v1 }
  0x40   :  { %824 = vmatprep.subr.bf16.mxu1 %v1001_v0  ;;  %v605_v0 = vsub.s32 0, %v604_v62 }
  0x41   :  { %844 = vmatpush3.bf16.msra.mxu0 %v813_v18 }
  0x43   :  { %826 = vmatpush3.bf16.msra.mxu1 %v825_v40 }
  0x44   :  { %807 = vmatmul.mubr.f32.vlgmr.msra.gmra.mrb[0].mxu0 %v160_v17 }
  0x46   :  { %774 = vmatmul.mubr.f32.vlgmr.msra.gmra.mrb[0].mxu1 %v161_v22 }
 0x117   :  { %v572_v42 = vpop.f32.mrb[0].mxu0 }
 0x118   :  { %v808_v43 = vpop.f32.mrb[1].mxu0 }
 0x119   :  { %v337_v44 = vpop.f32.mrb[0].mxu1 }
 0x11a   :  { %v845_v45 = vadd.f32 %v711_v41, %v337_v44  ;;  %v775_v46 = vpop.f32.mrb[1].mxu1 }
 0x11c   :  { %v846_v47 = vadd.f32 %v845_v45, %v572_v42 }
 0x11e   :  { %873 = vtanh.f32 %v846_v47 }
 0x128   :  { %v874_v49 = vpop.eup %873 }
 0x129   :  { %v584_v50 = vmul.f32 %v874_v49, %v712_v48 }
 0x12b   :  { %v585_v51 = vsel %vm87_vm1, %v584_v50, 0.0 }
 0x12c   :  { %586 = vadd.xlane.f32.xlu0 %v585_v51 }
 0x1b9   :  { %v587_v54 = vpop.xlane.xlu0 %586 }
 0x1ba   :  { %v590_v55 = vrot.slane %v587_v54, 4 }
 0x1bc   :  { %v591_v56 = vmax.f32 %v587_v54, %v590_v55 }
 0x1be   :  { %v592_v57 = vrot.slane %v591_v56, 2 }
 0x1c0   :  { %v593_v58 = vmax.f32 %v591_v56, %v592_v57 }
 0x1c2   :  { %v594_v59 = vrot.slane %v593_v58, 1 }
 0x1c4   :  { %v595_v60 = vmax.f32 %v593_v58, %v594_v59 }
 0x1c6   :  { %855 = vpush %v595_v60 }
 0x1f7   :  { %s856_s2 = spop %855 }
 0x1f8   :  { %v597_v2 = vstv %s856_s2 }
 0x1f9   :  { %v598_v3 = vmax.f32 %v589_v63, %v597_v2 }
 0x1fb   :  { %v606_v4 = vrot.slane %v598_v3, %v605_v0  ;;  %656 = vst.msk [vmem:[#allocation2] sm:$0x1] %vm60_vm2, %v598_v3  ;;  %v599_v5 = vsub.f32 %v589_v63, %v598_v3 }
 0x1fd   :  { %v608_v6 = vsub.f32 %v587_v54, %v606_v4  ;;  %v600_v8 = vmul.f32 1.442695, %v599_v5 }
 0x1ff   :  { %v609_v7 = vmul.f32 1.442695, %v608_v6 }
 0x201   :  { %875 = vpow2.f32 %v609_v7 }
 0x202   :  { %v660_v10 = vld [vmem:[#allocation2] sm:$0x1]  ;;  %877 = vpow2.f32 %v600_v8 }
 0x203   :  { %661 = vst.msk [vmem:[#allocation10] sm:$0x1] %vm60_vm2, %v660_v10 }
 0x20b   :  { %v876_v11 = vpop.eup %875 }
 0x20c   :  { %642 = vperm.xlu1 %871, %v876_v11   ;;  %v615_v12 = vsel %vm614_vm3, %v876_v11, 0.0  ;;  %v878_v13 = vpop.eup %877 }
 0x20d   :  { %616 = vadd.xlane.f32.xlu0 %v615_v12 }
 0x210   :  { %632 = vperm.xlu1 %871, %v878_v13  }
 0x211   :  { %934 = shalt.err (!%p931_p6)
}
 0x212   :  { %s935_s30 = scalar_lea.hbm %s1171_s4, 16 }
 0x213   :  { %p936_p7 = scmp.ne.s32.totalorder %s1171_s4, %s935_s30  ;;  %p939_p8 = scmp.lt.u32.totalorder %s935_s30, %s1171_s4 }
 0x215   :  { %p941_p9 = pnand %p939_p8, %p936_p7 }
 0x217   :  { %944 = shalt.err (!%p941_p9)
}
 0x218   :  { %675 = dma.vmem_to_hbm [thread:$0]  %s673_s25, 16, %s1171_s4, [#allocation7]   ;;  %v629_v22 = vld [vmem:[#allocation4] sm:$0x1]  ;;  %v612_v34 = vld [vmem:[#allocation3] sm:$0x1] }
 0x219   :  { %v613_v35 = vmul.f32 %v878_v13, %v612_v34  ;;  %s1007_s13 = smov [#allocation11]   ;;  %s1008_s15 = smov [#allocation13]  }
 0x21a   :  { %s682_s14 = sshll.u32 %s1007_s13, 4  ;;  %s692_s16 = sshll.u32 %s1008_s15, 4  ;;  %s683_s14 = int_to_ptr.vmem [resolvable:$true] %s682_s14  ;;  %s1134_s16 = int_to_ptr.vmem [resolvable:$true] %s692_s16 }
 0x21b   :  { %s945_s17 = scalar_lea.vmem %s683_s14, 16  ;;  %s949_s18 = scalar_lea.vmem %s683_s14, 32 }
 0x21c   :  { %p946_p10 = scmp.ne.s32.totalorder %s683_s14, %s945_s17  ;;  %p950_p11 = scmp.lt.s32.totalorder %s683_s14, %s683_s14 }
 0x21d   :  { %p951_p12 = scmp.lt.s32.totalorder %s949_s18, %s945_s17 }
 0x21f   :  { %p952_p13 = por %p951_p12, %p950_p11 }
 0x221   :  { %p953_p0 = pnand %p952_p13, %p946_p10 }
 0x28b   :  { %v643_v1 = vpop.permute.xlu1 %642 }
 0x28c   :  { %v645_v14 = vmul.f32 %v643_v1, %v1081_v9 }
 0x28e   :  { %v646_v15 = vsel %vm87_vm1, %v645_v14, 0.0 }
 0x28f   :  { %v647_v16 = vrot.slane %v646_v15, 4  ;;  %v633_v18 = vpop.permute.xlu1 %632 }
 0x290   :  { %v638_v21 = vrot.slane %v633_v18, %v605_v0 }
 0x291   :  { %v648_v17 = vadd.f32 %v647_v16, %v646_v15 }
 0x292   :  { %v639_v25 = vmul.f32 %v638_v21, %v629_v22 }
 0x293   :  { %v649_v19 = vrot.slane %v648_v17, 2 }
 0x295   :  { %v650_v20 = vadd.f32 %v649_v19, %v648_v17 }
 0x297   :  { %v651_v23 = vrot.slane %v650_v20, 1 }
 0x299   :  { %v652_v24 = vadd.f32 %v651_v23, %v650_v20 }
 0x29a   :  { %v617_v26 = vpop.xlane.xlu0 %616 }
 0x29b   :  { %v653_v27 = vadd.f32 %v652_v24, %v639_v25  ;;  %v618_v28 = vrot.slane %v617_v26, 4 }
 0x29d   :  { %655 = vst.msk [vmem:[#allocation4] sm:$0x1] %vm63_vm4, %v653_v27  ;;  %v619_v29 = vadd.f32 %v618_v28, %v617_v26 }
 0x29f   :  { %v620_v30 = vrot.slane %v619_v29, 2 }
 0x2a1   :  { %v621_v9 = vadd.f32 %v620_v30, %v619_v29 }
 0x2a3   :  { %v622_v31 = vrot.slane %v621_v9, 1 }
 0x2a4   :  { %v664_v32 = vld [vmem:[#allocation4] sm:$0x1] }
 0x2a5   :  { %v623_v33 = vadd.f32 %v622_v31, %v621_v9  ;;  %665 = vst.msk [vmem:[#allocation13] sm:$0x1] %vm63_vm4, %v664_v32 }
 0x2a7   :  { %857 = vpush %v623_v33 }
 0x2d8   :  { %s858_s4 = spop %857 }
 0x2d9   :  { %v625_v36 = vstv %s858_s4 }
 0x2da   :  { %v626_v37 = vadd.f32 %v625_v36, %v613_v35 }
 0x2dc   :  { %628 = vst.msk [vmem:[#allocation3] sm:$0x1] %vm60_vm2, %v626_v37 }
 0x2e3   :  { %v662_v38 = vld [vmem:[#allocation3] sm:$0x1] }
 0x2e4   :  { %663 = vst.msk [vmem:[#allocation11] sm:$0x1] %vm60_vm2, %v662_v38 }
 0x2e5   :  { %956 = shalt.err (!%p953_p0)
}
 0x2e6   :  { %s957_s20 = scalar_lea.hbm %s1172_s5, 16 }
 0x2e7   :  { %p958_p1 = scmp.ne.s32.totalorder %s1172_s5, %s957_s20  ;;  %p961_p2 = scmp.lt.u32.totalorder %s957_s20, %s1172_s5 }
 0x2e9   :  { %p963_p3 = pnand %p961_p2, %p958_p1 }
 0x2eb   :  { %966 = shalt.err (!%p963_p3)
}
 0x2ec   :  { %685 = dma.vmem_to_hbm [thread:$0]  %s683_s14, 16, %s1172_s5, [#allocation12]  }
 0x2ed   :  { %s967_s3 = scalar_lea.vmem %s1134_s16, 16  ;;  %s971_s25 = scalar_lea.vmem %s1134_s16, 32 }
 0x2ee   :  { %p968_p4 = scmp.ne.s32.totalorder %s1134_s16, %s967_s3  ;;  %p972_p5 = scmp.lt.s32.totalorder %s1134_s16, %s1134_s16 }
 0x2ef   :  { %p973_p6 = scmp.lt.s32.totalorder %s971_s25, %s967_s3 }
 0x2f1   :  { %p974_p7 = por %p973_p6, %p972_p5 }
 0x2f3   :  { %p975_p8 = pnand %p974_p7, %p968_p4 }
 0x2f5   :  { %978 = shalt.err (!%p975_p8)
}
 0x2f6   :  { %s979_s28 = scalar_lea.hbm %s1173_s6, 16 }
 0x2f7   :  { %p980_p9 = scmp.ne.s32.totalorder %s1173_s6, %s979_s28  ;;  %p983_p10 = scmp.lt.u32.totalorder %s979_s28, %s1173_s6 }
 0x2f9   :  { %p985_p11 = pnand %p983_p10, %p980_p9 }
 0x2fb   :  { %988 = shalt.err (!%p985_p11)
}
 0x2fc   :  { %695 = dma.vmem_to_hbm [thread:$0]  %s1134_s16, 16, %s1173_s6, [#allocation12]  }
 0x2fd   :  { %993 = dma.done.wait [#allocation7], 16  }
 0x2fe   :  { %994 = vsyncadd [#allocation7], 4294967280 }
 0x2ff   :  { %995 = dma.done.wait [#allocation12], 32  }
 0x300   :  { %996 = vsyncadd [#allocation12], 4294967264 }
 0x301   :  { %705 = vsyncpa [#allocation6], 1 }
 0x302   :  { %706 = vsyncpa [#allocation9], 1 }
 0x303   :  { %707 = vsyncpa [#allocation7], 1 }
 0x304   :  { %708 = vsyncpa [#allocation12], 1 }

</bundles_post_ra>
